<compile_context>
chip_gen: v5e
topology: v5e:2x2
jax: 0.10.0
libtpu: 0.0.40
codegen_flags: <defaults>
</compile_context>

<pallas_src>
import functools

import jax
import jax.numpy as jnp
from jax.experimental import pallas as pl
from jax.experimental.pallas import tpu as pltpu


def _projection_kernel(x_ref, w1_ref, b1_ref, w2_ref, b2_ref, w3_ref, b3_ref,
                       out_ref, acc_ref, *, pooling_type, seq_total, fold,
                       feat_dim, s_tile, s2_len):
    """Grid = (B_tiles, S_tiles); axis 1 (packed sequence) is the reduction axis.

    x_ref   : (b_tile, s_tile, fold*feat_dim)   streamed in the caller dtype
    acc_ref : (b_tile, fold*feat_dim) fp32      running sum / running max
    out_ref : (b_tile, out_features)            written once, on the last S step
    """
    s = pl.program_id(1)
    num_s = pl.num_programs(1)

    # ---- init accumulator on the first S step ---------------------------
    @pl.when(s == 0)
    def _init():
        if pooling_type == "mean":
            acc_ref[...] = jnp.zeros_like(acc_ref)
        else:  # max: must init to -inf, not zeros
            acc_ref[...] = jnp.full_like(acc_ref, -jnp.inf)

    def accumulate(x):
        if pooling_type == "mean":
            # Upcast before the sum so accumulation happens in fp32.
            acc_ref[...] += jnp.sum(x.astype(jnp.float32), axis=1)
        else:
            # Reduce in the streamed dtype (exact for max); upcast only the
            # tiny (b_tile, D2) result.
            acc_ref[...] = jnp.maximum(acc_ref[...],
                                       jnp.max(x, axis=1).astype(jnp.float32))

    # ---- hot per-tile path: masking only on the ragged last tile ---------
    s_rem = s2_len % s_tile
    if s_rem == 0:
        accumulate(x_ref[...])
    else:
        @pl.when(s < num_s - 1)
        def _hot():
            accumulate(x_ref[...])

        @pl.when(s == num_s - 1)
        def _ragged_tail():
            x = x_ref[...]
            row = jax.lax.broadcasted_iota(jnp.int32, x.shape, dimension=1)
            pad = 0.0 if pooling_type == "mean" else -jnp.inf
            x = jnp.where(row < s_rem, x, jnp.array(pad, dtype=x.dtype))
            accumulate(x)

    # ---- finalize: fold lanes + tiny MLP, once per B tile ----------------
    @pl.when(s == num_s - 1)
    def _finalize():
        acc = acc_ref[...]
        pooled = acc[:, 0:feat_dim]
        for i in range(1, fold):                       # static python loop (fold <= 16)
            piece = acc[:, i * feat_dim:(i + 1) * feat_dim]
            if pooling_type == "mean":
                pooled = pooled + piece
            else:
                pooled = jnp.maximum(pooled, piece)
        if pooling_type == "mean":
            pooled = pooled * (1.0 / float(seq_total))  # divide by the true S, once

        h1 = jnp.dot(pooled, w1_ref[...], preferred_element_type=jnp.float32)
        h1 = jnp.maximum(h1 + b1_ref[...], 0.0)
        h2 = jnp.dot(h1, w2_ref[...], preferred_element_type=jnp.float32)
        h2 = jnp.maximum(h2 + b2_ref[...], 0.0)
        y = jnp.dot(h2, w3_ref[...], preferred_element_type=jnp.float32)
        out_ref[...] = (y + b3_ref[...]).astype(out_ref.dtype)


def _vmem_budgets():
    """Generation-aware (x double-buffer budget, vmem_limit_bytes)."""
    try:
        cap = int(pltpu.get_tpu_info().vmem_capacity_bytes)
    except Exception:
        cap = 64 * 1024 * 1024                 # be conservative (v7x-sized VMEM)
    if cap >= 100 * 1024 * 1024:               # v5e / v6e: 128 MiB per TensorCore
        return 48 * 1024 * 1024, 64 * 1024 * 1024
    return 28 * 1024 * 1024, 48 * 1024 * 1024  # v7x: 64 MiB per TensorCore


def _choose_tiles(B, S2, D2, itemsize, x_budget):
    """Pick (b_tile, s_tile) so the double-buffered x block stays under budget."""
    gran = 8 if itemsize >= 4 else (16 if itemsize == 2 else 32)  # sublane packing
    if B <= 8:
        b_tile = B
    else:
        # Ensure >= 2 batch tiles so the "parallel" axis can shard across v7x's 2 TCs.
        b_tile = min(128, ((-(-B // 2)) + 7) // 8 * 8)
    per_buf = x_budget // 2                    # BlockSpec double-buffers the x block
    min_s = min(S2, gran)
    while b_tile > 8 and b_tile * min_s * D2 * itemsize > per_buf:
        b_tile -= 8
    max_s = max(min_s, per_buf // max(1, b_tile * D2 * itemsize))
    if max_s >= S2:
        s_tile = S2
    else:
        s_tile = max(gran, (max_s // gran) * gran)
    return b_tile, s_tile


def projection_layer(x, params, pooling_type="mean", _tile_override=None):
    """Pallas implementation of ProjectionLayer.forward.

    x      : (B, S, D); streamed in its own dtype (cast at the producer if bf16
             streaming is wanted -- a wrapper-side cast would add an extra HBM pass).
    params : w1 (D,64), b1 (1,64), w2 (64,32), b2 (1,32), w3 (32,out), b3 (1,out)
             (weights stored transposed vs PyTorch so the kernel computes x @ W).
    """
    if pooling_type not in ("mean", "max"):
        raise ValueError("Pooling type not supported.")

    B, S, D = x.shape
    out_features = params["w3"].shape[1]

    # Lane-dense packing: pack `fold` sequence rows into the lane axis when D < 128.
    fold = 1
    if D < 128 and 128 % D == 0 and S % (128 // D) == 0:
        fold = 128 // D
    S2, D2 = S // fold, D * fold
    x2 = x.reshape(B, S2, D2) if fold > 1 else x   # free row-major reshape

    itemsize = jnp.dtype(x.dtype).itemsize
    x_budget, vmem_limit = _vmem_budgets()
    if _tile_override is not None:
        b_tile, s_tile = _tile_override
    else:
        b_tile, s_tile = _choose_tiles(B, S2, D2, itemsize, x_budget)
    grid = (pl.cdiv(B, b_tile), pl.cdiv(S2, s_tile))   # reduction axis (S) last

    def const(shape):
        return pl.BlockSpec(shape, lambda b, s: (0,) * len(shape))

    kernel = functools.partial(
        _projection_kernel, pooling_type=pooling_type, seq_total=S, fold=fold,
        feat_dim=D, s_tile=s_tile, s2_len=S2)

    w_bytes = sum(int(p.size) * jnp.dtype(p.dtype).itemsize for p in params.values())
    flops = 2 * B * S * D + 2 * B * (D * 64 + 64 * 32 + 32 * out_features)
    bytes_accessed = B * S * D * itemsize + w_bytes + B * out_features * 4
    cost = pl.CostEstimate(flops=flops, transcendentals=0,
                           bytes_accessed=bytes_accessed)

    return pl.pallas_call(
        kernel,
        out_shape=jax.ShapeDtypeStruct((B, out_features), jnp.float32),
        grid_spec=pltpu.PrefetchScalarGridSpec(
            num_scalar_prefetch=0,
            grid=grid,
            in_specs=[
                pl.BlockSpec((b_tile, s_tile, D2), lambda b, s: (b, s, 0)),
                const(params["w1"].shape), const(params["b1"].shape),
                const(params["w2"].shape), const(params["b2"].shape),
                const(params["w3"].shape), const(params["b3"].shape),
            ],
            out_specs=pl.BlockSpec((b_tile, out_features), lambda b, s: (b, 0)),
            scratch_shapes=[pltpu.VMEM((b_tile, D2), jnp.float32)],
        ),
        compiler_params=pltpu.CompilerParams(
            dimension_semantics=("parallel", "arbitrary"),
            vmem_limit_bytes=vmem_limit,
        ),
        cost_estimate=cost,
    )(x2, params["w1"], params["b1"], params["w2"], params["b2"],
      params["w3"], params["b3"])


def init_params(key, input_dim, out_features):
    """Deterministic synthetic parameter init (PyTorch-Linear-like uniform)."""
    ks = jax.random.split(key, 6)

    def linear(kw, kb, fan_in, fan_out):
        bound = 1.0 / jnp.sqrt(fan_in)
        w = jax.random.uniform(kw, (fan_in, fan_out), jnp.float32, -bound, bound)
        b = jax.random.uniform(kb, (1, fan_out), jnp.float32, -bound, bound)
        return w, b

    w1, b1 = linear(ks[0], ks[1], input_dim, 64)
    w2, b2 = linear(ks[2], ks[3], 64, 32)
    w3, b3 = linear(ks[4], ks[5], 32, out_features)
    return {"w1": w1, "b1": b1, "w2": w2, "b2": b2, "w3": w3, "b3": b3}


def projection_layer_ref(x, params, pooling_type="mean"):
    """Pure-JAX reference matching the PyTorch forward."""
    if pooling_type == "mean":
        pooled = jnp.mean(x, axis=1)
    else:
        pooled = jnp.max(x, axis=1)
    h1 = jax.nn.relu(pooled @ params["w1"] + params["b1"])
    h2 = jax.nn.relu(h1 @ params["w2"] + params["b2"])
    return h2 @ params["w3"] + params["b3"]


if __name__ == "__main__":
    B, S, D, OUT = 2, 8, 32, 4  # batch, seq, input_dim, out_features

    key = jax.random.PRNGKey(0)
    k_x, k_p, k_x2 = jax.random.split(key, 3)
    x = jax.random.normal(k_x, (B, S, D), jnp.float32)
    params = init_params(k_p, D, OUT)

    # Small demo shape: fp32 streamed directly -> tight tolerance vs fp32 reference.
    for pooling in ("mean", "max"):
        out = jax.block_until_ready(projection_layer(x, params, pooling_type=pooling))
        assert out.shape == (B, OUT)
        ref = projection_layer_ref(x, params, pooling_type=pooling)
        assert jnp.allclose(out, ref, atol=1e-4, rtol=1e-4), f"{pooling}: mismatch"

    # Exercise the multi-tile reduction + ragged-tail + lane-fold code paths:
    # S=40, D=32 -> fold=4, S2=10; forced s_tile=8 -> 2 S tiles with a ragged tail of 2.
    x_big = jax.random.normal(k_x2, (B, 40, D), jnp.float32)
    for pooling in ("mean", "max"):
        out = jax.block_until_ready(
            projection_layer(x_big, params, pooling_type=pooling,
                             _tile_override=(B, 8)))
        ref = projection_layer_ref(x_big, params, pooling_type=pooling)
        assert jnp.allclose(out, ref, atol=1e-4, rtol=1e-4), \
            f"{pooling}: ragged/multi-tile mismatch"

    print("KERNEL_OK")
</pallas_src>

<mosaic_0001>
module attributes {stable_mosaic.version = 11 : i64} {
  func.func @_projection_kernel(%arg0: i32, %arg1: i32, %arg2: memref<2x2x128xf32, #tpu.memory_space<vmem>>, %arg3: memref<32x64xf32, #tpu.memory_space<vmem>>, %arg4: memref<1x64xf32, #tpu.memory_space<vmem>>, %arg5: memref<64x32xf32, #tpu.memory_space<vmem>>, %arg6: memref<1x32xf32, #tpu.memory_space<vmem>>, %arg7: memref<32x4xf32, #tpu.memory_space<vmem>>, %arg8: memref<1x4xf32, #tpu.memory_space<vmem>>, %arg9: memref<2x4xf32, #tpu.memory_space<vmem>>, %arg10: memref<2x128xf32, #tpu.memory_space<vmem>>) attributes {dimension_semantics = [#tpu.dimension_semantics<parallel>, #tpu.dimension_semantics<arbitrary>], iteration_bounds = array<i64: 1, 1>, scalar_prefetch = 0 : i64, scratch_operands = 1 : i64, tpu.core_type = #tpu.core_type<tc>, window_params = [{transform_indices = @transform_0, window_bounds = array<i64: 2, 2, 128>}, {pipeline_mode = #tpu.pipeline_mode<synchronous>, transform_indices = @transform_1, window_bounds = array<i64: 32, 64>}, {pipeline_mode = #tpu.pipeline_mode<synchronous>, transform_indices = @transform_2, window_bounds = array<i64: 1, 64>}, {pipeline_mode = #tpu.pipeline_mode<synchronous>, transform_indices = @transform_3, window_bounds = array<i64: 64, 32>}, {pipeline_mode = #tpu.pipeline_mode<synchronous>, transform_indices = @transform_4, window_bounds = array<i64: 1, 32>}, {pipeline_mode = #tpu.pipeline_mode<synchronous>, transform_indices = @transform_5, window_bounds = array<i64: 32, 4>}, {pipeline_mode = #tpu.pipeline_mode<synchronous>, transform_indices = @transform_6, window_bounds = array<i64: 1, 4>}, {transform_indices = @transform_7, window_bounds = array<i64: 2, 4>}]} {
    %c0_i32 = arith.constant 0 : i32
    %0 = arith.cmpi eq, %arg1, %c0_i32 : i32
    %1 = arith.extui %0 : i1 to i32
    %c0_i32_0 = arith.constant 0 : i32
    %2 = arith.cmpi ne, %1, %c0_i32_0 : i32
    scf.if %2 {
      %cst_9 = arith.constant 0.000000e+00 : f32
      %11 = vector.broadcast %cst_9 : f32 to vector<2x128xf32>
      %c0_10 = arith.constant 0 : index
      %c0_11 = arith.constant 0 : index
      %12 = vector.load %arg10[%c0_10, %c0_11] : memref<2x128xf32, #tpu.memory_space<vmem>>, vector<2x128xf32>
      tpu.vector_store %arg10[%c0_10, %c0_11], %11 {strides = array<i32>} : memref<2x128xf32, #tpu.memory_space<vmem>>, vector<2x128xf32>,
    } else {
    }
    %c0 = arith.constant 0 : index
    %c0_1 = arith.constant 0 : index
    %c0_2 = arith.constant 0 : index
    %3 = vector.load %arg2[%c0, %c0_1, %c0_2] : memref<2x2x128xf32, #tpu.memory_space<vmem>>, vector<2x2x128xf32>
    %c0_3 = arith.constant 0 : index
    %c0_4 = arith.constant 0 : index
    %4 = vector.load %arg10[%c0_3, %c0_4] : memref<2x128xf32, #tpu.memory_space<vmem>>, vector<2x128xf32>
    %cst = arith.constant dense<0.000000e+00> : vector<2x128xf32>
    %5 = vector.multi_reduction <add>, %3, %cst [1] : vector<2x2x128xf32> to vector<2x128xf32>
    %6 = arith.addf %4, %5 : vector<2x128xf32>
    %c0_5 = arith.constant 0 : index
    %c0_6 = arith.constant 0 : index
    %7 = vector.load %arg10[%c0_5, %c0_6] : memref<2x128xf32, #tpu.memory_space<vmem>>, vector<2x128xf32>
    tpu.vector_store %arg10[%c0_5, %c0_6], %6 {strides = array<i32>} : memref<2x128xf32, #tpu.memory_space<vmem>>, vector<2x128xf32>,
    %c0_i32_7 = arith.constant 0 : i32
    %8 = arith.cmpi eq, %arg1, %c0_i32_7 : i32
    %9 = arith.extui %8 : i1 to i32
    %c0_i32_8 = arith.constant 0 : i32
    %10 = arith.cmpi ne, %9, %c0_i32_8 : i32
    scf.if %10 {
      %c0_9 = arith.constant 0 : index
      %c0_10 = arith.constant 0 : index
      %11 = vector.load %arg10[%c0_9, %c0_10] : memref<2x128xf32, #tpu.memory_space<vmem>>, vector<2x128xf32>
      %12 = vector.extract_strided_slice %11 {offsets = [0, 0], sizes = [2, 32], strides = [1, 1]} : vector<2x128xf32> to vector<2x32xf32>
      %13 = vector.extract_strided_slice %11 {offsets = [0, 32], sizes = [2, 32], strides = [1, 1]} : vector<2x128xf32> to vector<2x32xf32>
      %14 = arith.addf %12, %13 : vector<2x32xf32>
      %15 = vector.extract_strided_slice %11 {offsets = [0, 64], sizes = [2, 32], strides = [1, 1]} : vector<2x128xf32> to vector<2x32xf32>
      %16 = arith.addf %14, %15 : vector<2x32xf32>
      %17 = vector.extract_strided_slice %11 {offsets = [0, 96], sizes = [2, 32], strides = [1, 1]} : vector<2x128xf32> to vector<2x32xf32>
      %18 = arith.addf %16, %17 : vector<2x32xf32>
      %cst_11 = arith.constant 1.250000e-01 : f32
      %19 = vector.broadcast %cst_11 : f32 to vector<2x32xf32>
      %20 = arith.mulf %18, %19 : vector<2x32xf32>
      %c0_12 = arith.constant 0 : index
      %c0_13 = arith.constant 0 : index
      %21 = vector.load %arg3[%c0_12, %c0_13] : memref<32x64xf32, #tpu.memory_space<vmem>>, vector<32x64xf32>
      %cst_14 = arith.constant dense<0.000000e+00> : vector<2x64xf32>
      %22 = tpu.matmul %20, %21, %cst_14 {dimension_numbers = #tpu.dot_dimension_numbers<[1], [0], [0], [1], [0, 0, 1, 1], [], []>} : vector<2x32xf32>, vector<32x64xf32>, vector<2x64xf32> -> vector<2x64xf32>
      %c0_15 = arith.constant 0 : index
      %c0_16 = arith.constant 0 : index
      %23 = vector.load %arg4[%c0_15, %c0_16] : memref<1x64xf32, #tpu.memory_space<vmem>>, vector<1x64xf32>
      %24 = vector.broadcast %23 : vector<1x64xf32> to vector<2x64xf32>
      %25 = arith.addf %22, %24 : vector<2x64xf32>
      %cst_17 = arith.constant 0.000000e+00 : f32
      %26 = vector.broadcast %cst_17 : f32 to vector<2x64xf32>
      %27 = arith.maximumf %25, %26 : vector<2x64xf32>
      %c0_18 = arith.constant 0 : index
      %c0_19 = arith.constant 0 : index
      %28 = vector.load %arg5[%c0_18, %c0_19] : memref<64x32xf32, #tpu.memory_space<vmem>>, vector<64x32xf32>
      %cst_20 = arith.constant dense<0.000000e+00> : vector<2x32xf32>
      %29 = tpu.matmul %27, %28, %cst_20 {dimension_numbers = #tpu.dot_dimension_numbers<[1], [0], [0], [1], [0, 0, 1, 1], [], []>} : vector<2x64xf32>, vector<64x32xf32>, vector<2x32xf32> -> vector<2x32xf32>
      %c0_21 = arith.constant 0 : index
      %c0_22 = arith.constant 0 : index
      %30 = vector.load %arg6[%c0_21, %c0_22] : memref<1x32xf32, #tpu.memory_space<vmem>>, vector<1x32xf32>
      %31 = vector.broadcast %30 : vector<1x32xf32> to vector<2x32xf32>
      %32 = arith.addf %29, %31 : vector<2x32xf32>
      %cst_23 = arith.constant 0.000000e+00 : f32
      %33 = vector.broadcast %cst_23 : f32 to vector<2x32xf32>
      %34 = arith.maximumf %32, %33 : vector<2x32xf32>
      %c0_24 = arith.constant 0 : index
      %c0_25 = arith.constant 0 : index
      %35 = vector.load %arg7[%c0_24, %c0_25] : memref<32x4xf32, #tpu.memory_space<vmem>>, vector<32x4xf32>
      %cst_26 = arith.constant dense<0.000000e+00> : vector<2x4xf32>
      %36 = tpu.matmul %34, %35, %cst_26 {dimension_numbers = #tpu.dot_dimension_numbers<[1], [0], [0], [1], [0, 0, 1, 1], [], []>} : vector<2x32xf32>, vector<32x4xf32>, vector<2x4xf32> -> vector<2x4xf32>
      %c0_27 = arith.constant 0 : index
      %c0_28 = arith.constant 0 : index
      %37 = vector.load %arg8[%c0_27, %c0_28] : memref<1x4xf32, #tpu.memory_space<vmem>>, vector<1x4xf32>
      %38 = vector.broadcast %37 : vector<1x4xf32> to vector<2x4xf32>
      %39 = arith.addf %36, %38 : vector<2x4xf32>
      %c0_29 = arith.constant 0 : index
      %c0_30 = arith.constant 0 : index
      %40 = vector.load %arg9[%c0_29, %c0_30] : memref<2x4xf32, #tpu.memory_space<vmem>>, vector<2x4xf32>
      tpu.vector_store %arg9[%c0_29, %c0_30], %39 {strides = array<i32>} : memref<2x4xf32, #tpu.memory_space<vmem>>, vector<2x4xf32>,
    } else {
    }
    return
  }
  func.func @transform_0(%arg0: i32, %arg1: i32) -> (i32, i32, i32) {
    %c0_i32 = arith.constant 0 : i32
    %c0_i32_0 = arith.constant 0 : i32
    return %arg0, %arg1, %c0_i32 : i32, i32, i32
  }
  func.func @transform_1(%arg0: i32, %arg1: i32) -> (i32, i32) {
    %c0_i32 = arith.constant 0 : i32
    %c0_i32_0 = arith.constant 0 : i32
    %c0_i32_1 = arith.constant 0 : i32
    return %c0_i32, %c0_i32_0 : i32, i32
  }
  func.func @transform_2(%arg0: i32, %arg1: i32) -> (i32, i32) {
    %c0_i32 = arith.constant 0 : i32
    %c0_i32_0 = arith.constant 0 : i32
    %c0_i32_1 = arith.constant 0 : i32
    return %c0_i32, %c0_i32_0 : i32, i32
  }
  func.func @transform_3(%arg0: i32, %arg1: i32) -> (i32, i32) {
    %c0_i32 = arith.constant 0 : i32
    %c0_i32_0 = arith.constant 0 : i32
    %c0_i32_1 = arith.constant 0 : i32
    return %c0_i32, %c0_i32_0 : i32, i32
  }
  func.func @transform_4(%arg0: i32, %arg1: i32) -> (i32, i32) {
    %c0_i32 = arith.constant 0 : i32
    %c0_i32_0 = arith.constant 0 : i32
    %c0_i32_1 = arith.constant 0 : i32
    return %c0_i32, %c0_i32_0 : i32, i32
  }
  func.func @transform_5(%arg0: i32, %arg1: i32) -> (i32, i32) {
    %c0_i32 = arith.constant 0 : i32
    %c0_i32_0 = arith.constant 0 : i32
    %c0_i32_1 = arith.constant 0 : i32
    return %c0_i32, %c0_i32_0 : i32, i32
  }
  func.func @transform_6(%arg0: i32, %arg1: i32) -> (i32, i32) {
    %c0_i32 = arith.constant 0 : i32
    %c0_i32_0 = arith.constant 0 : i32
    %c0_i32_1 = arith.constant 0 : i32
    return %c0_i32, %c0_i32_0 : i32, i32
  }
  func.func @transform_7(%arg0: i32, %arg1: i32) -> (i32, i32) {
    %c0_i32 = arith.constant 0 : i32
    %c0_i32_0 = arith.constant 0 : i32
    return %arg0, %c0_i32 : i32, i32
  }
}

</mosaic_0001>

<bundles_post_ra>
// kernel: tpu_custom_call.1
= control target key start
LH: loop header
LB: loop body
LE: loop exit
PB: predicated region body
PF: predicated region fallthrough
CT: control target
= control target key end

     0   :  { %vm35_vm0 = vcmask 1041408   ;;  %v231_v2 = vmov 0.0   ;;  %s344_s0 = inlined_call_operand.vmem [shape: f32[2,2,128], index: 0, kind: input, shape index: {}]   ;;  %s345_s1 = inlined_call_operand.vmem [shape: f32[32,64], index: 1, kind: input, shape index: {}]   ;;  %s346_s2 = inlined_call_operand.vmem [shape: f32[1,64], index: 2, kind: input, shape index: {}]   ;;  %s347_s3 = inlined_call_operand.vmem [shape: f32[64,32], index: 3, kind: input, shape index: {}]   ;;  %s348_s4 = inlined_call_operand.vmem [shape: f32[1,32], index: 4, kind: input, shape index: {}]   ;;  %s349_s5 = inlined_call_operand.vmem [shape: f32[32,4], index: 5, kind: input, shape index: {}]   ;;  %s350_s6 = inlined_call_operand.vmem [shape: f32[1,4], index: 6, kind: input, shape index: {}]   ;;  %s351_s7 = inlined_call_operand.hbm [shape: f32[2,4], index: 7, kind: output, shape index: {}]  }
   0x1   :  { %v32_v0 = vld [vmem:[%s344_s0] sm:$0x3]  ;;  %v33_v1 = vld [vmem:[%s344_s0 + $0x2] sm:$0x3]  ;;  %31 = vst [vmem:[#allocation2] sm:$0x3] %v231_v2 }
   0x2   :  { %v36_v3 = vsel %vm35_vm0, %v32_v0, 0.0  ;;  %v43_v4 = vsel %vm35_vm0, %v33_v1, 0.0 }
   0x3   :  { %v37_v5 = vrot.slane %v36_v3, 4  ;;  %v44_v6 = vrot.slane %v43_v4, 4 }
   0x4   :  { %12 = vsyncpa [#allocation4], 0  ;;  %vm52_vm1 = vcmask 1041409   ;;  %s232_s0 = smov 96   ;;  %s233_s28 = smov 32   ;;  %v78_v21 = vld [vmem:[%s345_s1 + $0x18] sm:$0xff] }
   0x5   :  { %v38_v7 = vadd.f32 %v37_v5, %v36_v3  ;;  %v45_v8 = vadd.f32 %v44_v6, %v43_v4  ;;  %s234_s29 = smov 64   ;;  %99 = vmatpush.msra.mxu0 %v78_v21  ;;  %v77_v22 = vld [vmem:[%s345_s1 + $0x10] sm:$0xff]  ;;  %v76_v23 = vld [vmem:[%s345_s1 + $0x8] sm:$0xff]  ;;  %v75_v24 = vld [vmem:[%s345_s1] sm:$0xff]  ;;  %vm83_vm2 = vcmask 261120   ;;  %vm120_vm3 = vcmask 523264  }
   0x6   :  { %v115_v25 = vld [vmem:[%s347_s3 + $0x38] sm:$0xff]  ;;  %v114_v26 = vld [vmem:[%s347_s3 + $0x30] sm:$0xff]  ;;  %v113_v27 = vld [vmem:[%s347_s3 + $0x28] sm:$0xff]  ;;  %s235_s18 = smov [#allocation3]   ;;  %vm176_vm4 = vcmask 25600  }
   0x7   :  { %v39_v9 = vrot.slane %v38_v7, 2  ;;  %v46_v10 = vrot.slane %v45_v8, 2  ;;  %100 = vmatpush.msra.mxu0 %v77_v22  ;;  %132 = vmatpush.msra.mxu1 %v115_v25  ;;  %v112_v28 = vld [vmem:[%s347_s3 + $0x20] sm:$0xff]  ;;  %v111_v29 = vld [vmem:[%s347_s3 + $0x18] sm:$0xff]  ;;  %v110_v37 = vld [vmem:[%s347_s3 + $0x10] sm:$0xff]  ;;  %s183_s19 = sshll.u32 %s235_s18, 4  ;;  %s184_s19 = int_to_ptr.vmem [resolvable:$true] %s183_s19 }
   0x8   :  { %v34_v15 = vld [vmem:[#allocation2] sm:$0x3]  ;;  %v109_v38 = vld [vmem:[%s347_s3 + $0x8] sm:$0xff]  ;;  %v148_v40 = vld [vmem:[%s349_s5 + $0x18] sm:$0xff] }
   0x9   :  { %v40_v11 = vadd.f32 %v39_v9, %v38_v7  ;;  %v47_v12 = vadd.f32 %v46_v10, %v45_v8  ;;  %101 = vmatpush.msra.mxu0 %v76_v23  ;;  %133 = vmatpush.msra.mxu1 %v114_v26  ;;  %v108_v39 = vld [vmem:[%s347_s3] sm:$0xff]  ;;  %v147_v45 = vld [vmem:[%s349_s5 + $0x10] sm:$0xff]  ;;  %v146_v46 = vld [vmem:[%s349_s5 + $0x8] sm:$0xff] }
   0xa   :  { %168 = vmatpush.msra.mxu2 %v148_v40  ;;  %v202_v41 = vld [vmem:[%s346_s2] ss:$0 sm:$0xff] }
   0xb   :  { %v41_v13 = vrot.slane %v40_v11, 1  ;;  %v48_v14 = vrot.slane %v47_v12, 1  ;;  %102 = vmatpush.msra.mxu0 %v75_v24  ;;  %134 = vmatpush.msra.mxu1 %v113_v27  ;;  %v145_v47 = vld [vmem:[%s349_s5] sm:$0xff]  ;;  %s185_s5 = sshll.u32 %s351_s7, 4  ;;  %s186_s5 = int_to_ptr.hbm [resolvable:$true] %s185_s5 }
   0xc   :  { %169 = vmatpush.msra.mxu2 %v147_v45  ;;  %v203_v48 = vld [vmem:[%s348_s4] ss:$0 sm:$0xff] }
   0xd   :  { %v42_v16 = vadd.f32 %v41_v13, %v40_v11  ;;  %v49_v17 = vadd.f32 %v48_v14, %v47_v12  ;;  %135 = vmatpush.msra.mxu1 %v112_v28  ;;  %v204_v52 = vld [vmem:[%s350_s6] ss:$0 sm:$0xff] }
   0xe   :  { %170 = vmatpush.msra.mxu2 %v146_v46 }
   0xf   :  { %v53_v18 = vsel %vm52_vm1, %v49_v17, %v42_v16  ;;  %136 = vmatpush.msra.mxu1 %v111_v29 }
  0x10   :  { %v55_v19 = vadd.f32 %v53_v18, %v34_v15  ;;  %171 = vmatpush.msra.mxu2 %v145_v47 }
  0x11   :  { %137 = vmatpush.msra.mxu1 %v110_v37 }
  0x12   :  { %56 = vst [vmem:[#allocation2] sm:$0x3] %v55_v19 }
  0x13   :  { %138 = vmatpush.msra.mxu1 %v109_v38 }
  0x15   :  { %139 = vmatpush.msra.mxu1 %v108_v39 }
  0x19   :  { %v60_v20 = vld [vmem:[#allocation2] sm:$0x3] }
  0x1a   :  { %62 = vrot.lane.b32.xlu0 %v60_v20, %s232_s0  ;;  %70 = vrot.lane.b32.xlu1 %v60_v20, %s233_s28 }
  0x22   :  { %66 = vrot.lane.b32.xlu0 %v60_v20, %s234_s29 }
  0x8c   :  { %v63_v30 = vpop.permute.xlu0 %62  ;;  %v71_v33 = vpop.permute.xlu1 %70 }
  0x8d   :  { %v65_v31 = vadd.f32 %v63_v30, %v60_v20 }
  0x94   :  { %v67_v32 = vpop.permute.xlu0 %66 }
  0x95   :  { %v69_v34 = vadd.f32 %v67_v32, %v65_v31 }
  0x97   :  { %v73_v35 = vadd.f32 %v71_v33, %v69_v34 }
  0x99   :  { %v74_v36 = vmul.f32 0.125, %v73_v35 }
  0x9b   :  { %194 = vmatmul.msk.f32.vlgmr.msra.gmra.mxu0 %vm83_vm2, %v74_v36 }
 0x118   :  { %v104_v42 = vpop.f32.mrf.mxu0 }
 0x119   :  { %v105_v43 = vadd.f32 %v202_v41, %v104_v42 }
 0x11b   :  { %v107_v44 = vmax.f32 %v105_v43, 0.0 }
 0x11d   :  { %195 = vmatmul.msk.f32.vlgmr.msra.gmra.mxu1 %vm120_vm3, %v107_v44 }
 0x19a   :  { %v141_v49 = vpop.f32.mrf.mxu1 }
 0x19b   :  { %v142_v50 = vadd.f32 %v203_v48, %v141_v49 }
 0x19d   :  { %v144_v51 = vmax.f32 %v142_v50, 0.0 }
 0x19f   :  { %196 = vmatmul.msk.f32.vlgmr.msra.gmra.mxu2 %vm83_vm2, %v144_v51 }
 0x222   :  { %v173_v53 = vpop.f32.mrf.mxu2 }
 0x223   :  { %v174_v54 = vadd.f32 %v204_v52, %v173_v53 }
 0x225   :  { %177 = vst.msk [vmem:[#allocation3] sm:$0x3] %vm176_vm4, %v174_v54 }
 0x226   :  { %188 = dma.vmem_to_hbm [thread:$0]  %s184_s19, 32, %s186_s5, [#allocation4]  }
 0x227   :  { %229 = dma.done.wait [#allocation4], 32  }
 0x228   :  { %230 = vsyncadd [#allocation4], 4294967264 }
 0x229   :  { %193 = vsyncpa [#allocation4], 1 }

</bundles_post_ra>
